<compile_context>
chip_gen: v5e
topology: v5e:2x2
jax: 0.10.0
libtpu: 0.0.40
codegen_flags: <defaults>
</compile_context>

<pallas_src>
import functools

import jax
import jax.numpy as jnp
from jax import lax
from jax.experimental import pallas as pl
from jax.experimental.pallas import tpu as pltpu


def _pconv_kernel(xf_ref, msum_ref, col_ref, w_ref, b_ref, out_ref,
                  *, kh, kw, width, pad, span):
    """One image per grid step (implicit im2col on a flat width-W raster).

    xf_ref  : (Cin, Lp)            bf16  row-padded, flattened input*mask
    msum_ref: (1, L)               f32   mask-window sums (mask_conv output)
    col_ref : (1, L)               i32   output column index (q mod W)
    w_ref   : (KH, KW, Cout, Cin)  bf16  weights, taps leading
    b_ref   : (Cout, 1)            f32   bias
    out_ref : (Cout, L)            f32   output on the width-W raster
    """
    cout, _ = out_ref.shape
    col = col_ref[...]                                   # (1, L) int32
    acc = jnp.zeros(out_ref.shape, jnp.float32)

    for j in range(kw):
        part = jnp.zeros(out_ref.shape, jnp.float32)
        for i in range(kh):
            start = i * width + j                        # static offset
            slab = xf_ref[:, start:start + span]         # (Cin, L) bf16
            part += jnp.dot(w_ref[i, j], slab,
                            preferred_element_type=jnp.float32)
        # Taps that would read outside the (un-padded) image width wrap onto a
        # neighbouring row in the flat layout -> zero those output columns.
        lo = max(pad - j, 0)
        hi = min(width + pad - j, width)
        if lo > 0 or hi < width:                         # static per-tap check
            valid = (col >= lo) & (col < hi)             # (1, L)
            part = jnp.where(valid, part, 0.0)
        acc = acc + part

    # Epilogue (kept in f32; bias cancels as in the PyTorch module):
    #   out = conv_nobias / mask_sum + b, holes -> 0
    msum = msum_ref[...]                                 # (1, L)
    hole = msum == 0.0
    msafe = jnp.where(hole, 1.0, msum)
    inv = pl.reciprocal(msafe, approx=True)              # EUP slot
    inv = inv * (2.0 - msafe * inv)                      # Newton: exact for counts
    res = acc * inv + b_ref[...]                         # (Cout, L)
    out_ref[...] = jnp.where(hole, 0.0, res).astype(out_ref.dtype)


@functools.partial(jax.jit, static_argnames=("stride", "padding"))
def partial_conv(x, mask, weight, bias, *, stride=1, padding=1):
    """x, mask: (N, Cin, H, W); weight: (Cout, Cin, KH, KW); bias: (Cout,)."""
    cout, cin, kh, kw = weight.shape
    n, _, h, w = x.shape
    if stride != 1 or 2 * padding > kw - 1:
        # TODO(synk): strided / over-padded configs need a wider raster; only
        # the stride-1, padding <= (kw-1)//2 fast path is implemented.
        raise NotImplementedError(
            "partial_conv Pallas path supports stride==1 and 2*padding<=kw-1")

    p = padding
    hp = h + 2 * p
    oh = hp - kh + 1
    ow = w + 2 * p - kw + 1                  # <= w
    span = oh * w                            # output laid on the width-w raster

    f32 = jnp.float32
    x = x.astype(f32)
    mask = mask.astype(f32)

    # Row-padded, spatially flattened (input*mask) in bf16.  Flat front/back
    # padding makes every tap's static slab offset non-negative / in-bounds.
    xm = (x * mask).astype(jnp.bfloat16)
    xp = jnp.pad(xm, ((0, 0), (0, 0), (p, p), (0, 0)))          # (N,Cin,Hp,W)
    front, back = p, max(kw - 1 - p, 0)
    xf = jnp.pad(xp.reshape(n, cin, hp * w), ((0, 0), (0, 0), (front, back)))
    lp = hp * w + front + back

    # mask_conv with an all-ones weight == per-output-pixel window sum of mask
    # (channel-invariant), so a single (1, L) row per image suffices.
    msum = lax.reduce_window(
        jnp.sum(mask, axis=1), 0.0, lax.add,
        window_dimensions=(1, kh, kw), window_strides=(1, 1, 1),
        padding=((0, 0), (p, p), (p, p)))                        # (N, OH, OW)
    msum_w = msum if ow == w else jnp.pad(msum, ((0, 0), (0, 0), (0, w - ow)))
    msum_flat = msum_w.reshape(n, 1, span)

    # Output-column index row (q mod W) for the per-tap wrap masks.
    colidx = jnp.tile(jnp.arange(w, dtype=jnp.int32), oh).reshape(1, span)

    w_r = jnp.transpose(weight.astype(jnp.bfloat16), (2, 3, 0, 1))  # (KH,KW,Cout,Cin)
    b2d = bias.astype(f32).reshape(cout, 1)

    kernel = functools.partial(_pconv_kernel, kh=kh, kw=kw, width=w, pad=p,
                               span=span)

    out_flat = pl.pallas_call(
        kernel,
        out_shape=jax.ShapeDtypeStruct((n, cout, span), f32),
        grid_spec=pltpu.PrefetchScalarGridSpec(
            num_scalar_prefetch=0,
            grid=(n,),
            in_specs=[
                pl.BlockSpec((None, cin, lp), lambda i: (i, 0, 0)),   # flat image
                pl.BlockSpec((None, 1, span), lambda i: (i, 0, 0)),   # mask sums
                pl.BlockSpec((1, span), lambda i: (0, 0)),            # col index
                pl.BlockSpec((kh, kw, cout, cin),                      # weights
                             lambda i: (0, 0, 0, 0)),
                pl.BlockSpec((cout, 1), lambda i: (0, 0)),            # bias
            ],
            out_specs=pl.BlockSpec((None, cout, span), lambda i: (i, 0, 0)),
        ),
        compiler_params=pltpu.CompilerParams(
            dimension_semantics=("parallel",),          # shards N across TCs
            vmem_limit_bytes=32 * 1024 * 1024),
    )(xf, msum_flat, colidx, w_r, b2d)

    out = out_flat.reshape(n, cout, oh, w)              # free trailing reshape
    if ow != w:                                         # only when 2p < kw-1
        out = out[..., :ow]

    # new_mask is a per-pixel indicator broadcast over Cout.  Kept full-size
    # for parity with the PyTorch module; consumers could take the narrow
    # (N, 1, OH, OW) indicator to avoid this redundant HBM write.
    hole = (msum == 0.0)[:, None, :, :]
    new_mask = jnp.broadcast_to(jnp.where(hole, 0.0, 1.0), (n, cout, oh, ow))
    return out, new_mask


def _reference(x, mask, weight, bias, stride, padding):
    # Pure-JAX reference mirroring the PyTorch forward, at the kernel's input
    # precision (bf16-rounded activations & weights, f32 accumulation).
    dn = ("NCHW", "OIHW", "NCHW")
    pad2 = [(padding, padding), (padding, padding)]
    conv = lambda a, wgt: lax.conv_general_dilated(
        a, wgt, (stride, stride), pad2, dimension_numbers=dn)
    xm = (x * mask).astype(jnp.bfloat16).astype(jnp.float32)
    w16 = weight.astype(jnp.bfloat16).astype(jnp.float32)
    out = conv(xm, w16) + bias.reshape(1, -1, 1, 1)
    out_bias = jnp.broadcast_to(bias.reshape(1, -1, 1, 1), out.shape)
    out_mask = conv(mask, jnp.ones_like(weight))
    holes = out_mask == 0
    mask_sum = jnp.where(holes, 1.0, out_mask)
    out_pre = (out - out_bias) / mask_sum + out_bias
    out = jnp.where(holes, 0.0, out_pre)
    new_mask = jnp.where(holes, 0.0, jnp.ones_like(out))
    return out, new_mask


if __name__ == "__main__":
    key = jax.random.PRNGKey(0)
    k_x, k_m, k_w, k_b = jax.random.split(key, 4)

    N, CIN, COUT, H, W = 2, 4, 8, 16, 16
    KH = KW = 3
    STRIDE, PAD = 1, 1

    x = jax.random.normal(k_x, (N, CIN, H, W), dtype=jnp.float32)
    # binary mask with some holes
    mask = (jax.random.uniform(k_m, (N, CIN, H, W)) > 0.4).astype(jnp.float32)
    weight = jax.random.normal(k_w, (COUT, CIN, KH, KW), dtype=jnp.float32) * 0.1
    bias = jax.random.normal(k_b, (COUT,), dtype=jnp.float32) * 0.1

    out, new_mask = partial_conv(x, mask, weight, bias,
                                 stride=STRIDE, padding=PAD)
    out = jax.block_until_ready(out)
    new_mask = jax.block_until_ready(new_mask)

    ref_out, ref_mask = _reference(x, mask, weight, bias, STRIDE, PAD)
    assert jnp.allclose(out, ref_out, atol=1e-3, rtol=1e-3), "output mismatch"
    assert jnp.allclose(new_mask, ref_mask), "new_mask mismatch"

    print("KERNEL_OK")
</pallas_src>

<mosaic_0001>
module attributes {stable_mosaic.version = 11 : i64} {
  func.func @_pconv_kernel(%arg0: i32, %arg1: memref<1x4x290xbf16, #tpu.memory_space<vmem>>, %arg2: memref<1x1x256xf32, #tpu.memory_space<vmem>>, %arg3: memref<1x256xi32, #tpu.memory_space<vmem>>, %arg4: memref<3x3x8x4xbf16, #tpu.memory_space<vmem>>, %arg5: memref<8x1xf32, #tpu.memory_space<vmem>>, %arg6: memref<1x8x256xf32, #tpu.memory_space<vmem>>) attributes {dimension_semantics = [#tpu.dimension_semantics<parallel>], iteration_bounds = array<i64: 2>, scalar_prefetch = 0 : i64, scratch_operands = 0 : i64, tpu.core_type = #tpu.core_type<tc>, window_params = [{transform_indices = @transform_0, window_bounds = array<i64: 1, 4, 290>}, {transform_indices = @transform_1, window_bounds = array<i64: 1, 1, 256>}, {pipeline_mode = #tpu.pipeline_mode<synchronous>, transform_indices = @transform_2, window_bounds = array<i64: 1, 256>}, {pipeline_mode = #tpu.pipeline_mode<synchronous>, transform_indices = @transform_3, window_bounds = array<i64: 3, 3, 8, 4>}, {pipeline_mode = #tpu.pipeline_mode<synchronous>, transform_indices = @transform_4, window_bounds = array<i64: 8, 1>}, {transform_indices = @transform_5, window_bounds = array<i64: 1, 8, 256>}]} {
    %c0 = arith.constant 0 : index
    %c0_0 = arith.constant 0 : index
    %0 = vector.load %arg3[%c0, %c0_0] : memref<1x256xi32, #tpu.memory_space<vmem>>, vector<1x256xi32>
    %cst = arith.constant 0.000000e+00 : f32
    %1 = vector.broadcast %cst : f32 to vector<8x256xf32>
    %cst_1 = arith.constant 0.000000e+00 : f32
    %2 = vector.broadcast %cst_1 : f32 to vector<8x256xf32>
    %c0_2 = arith.constant 0 : index
    %c0_3 = arith.constant 0 : index
    %c0_4 = arith.constant 0 : index
    %3 = vector.load %arg1[%c0_2, %c0_3, %c0_4] : memref<1x4x290xbf16, #tpu.memory_space<vmem>>, vector<1x4x256xbf16>
    %4 = vector.shape_cast %3 : vector<1x4x256xbf16> to vector<4x256xbf16>
    %c0_5 = arith.constant 0 : index
    %c0_6 = arith.constant 0 : index
    %c0_7 = arith.constant 0 : index
    %c0_8 = arith.constant 0 : index
    %5 = vector.load %arg4[%c0_5, %c0_6, %c0_7, %c0_8] : memref<3x3x8x4xbf16, #tpu.memory_space<vmem>>, vector<1x1x8x4xbf16>
    %6 = vector.shape_cast %5 : vector<1x1x8x4xbf16> to vector<8x4xbf16>
    %cst_9 = arith.constant dense<0.000000e+00> : vector<8x256xf32>
    %7 = tpu.matmul %6, %4, %cst_9 {dimension_numbers = #tpu.dot_dimension_numbers<[1], [0], [0], [1], [0, 0, 1, 1], [], []>} : vector<8x4xbf16>, vector<4x256xbf16>, vector<8x256xf32> -> vector<8x256xf32>
    %8 = arith.addf %2, %7 : vector<8x256xf32>
    %c0_10 = arith.constant 0 : index
    %c0_11 = arith.constant 0 : index
    %c16 = arith.constant 16 : index
    %9 = vector.load %arg1[%c0_10, %c0_11, %c16] : memref<1x4x290xbf16, #tpu.memory_space<vmem>>, vector<1x4x256xbf16>
    %10 = vector.shape_cast %9 : vector<1x4x256xbf16> to vector<4x256xbf16>
    %c1 = arith.constant 1 : index
    %c0_12 = arith.constant 0 : index
    %c0_13 = arith.constant 0 : index
    %c0_14 = arith.constant 0 : index
    %11 = vector.load %arg4[%c1, %c0_12, %c0_13, %c0_14] : memref<3x3x8x4xbf16, #tpu.memory_space<vmem>>, vector<1x1x8x4xbf16>
    %12 = vector.shape_cast %11 : vector<1x1x8x4xbf16> to vector<8x4xbf16>
    %cst_15 = arith.constant dense<0.000000e+00> : vector<8x256xf32>
    %13 = tpu.matmul %12, %10, %cst_15 {dimension_numbers = #tpu.dot_dimension_numbers<[1], [0], [0], [1], [0, 0, 1, 1], [], []>} : vector<8x4xbf16>, vector<4x256xbf16>, vector<8x256xf32> -> vector<8x256xf32>
    %14 = arith.addf %8, %13 : vector<8x256xf32>
    %c0_16 = arith.constant 0 : index
    %c0_17 = arith.constant 0 : index
    %c32 = arith.constant 32 : index
    %15 = vector.load %arg1[%c0_16, %c0_17, %c32] : memref<1x4x290xbf16, #tpu.memory_space<vmem>>, vector<1x4x256xbf16>
    %16 = vector.shape_cast %15 : vector<1x4x256xbf16> to vector<4x256xbf16>
    %c2 = arith.constant 2 : index
    %c0_18 = arith.constant 0 : index
    %c0_19 = arith.constant 0 : index
    %c0_20 = arith.constant 0 : index
    %17 = vector.load %arg4[%c2, %c0_18, %c0_19, %c0_20] : memref<3x3x8x4xbf16, #tpu.memory_space<vmem>>, vector<1x1x8x4xbf16>
    %18 = vector.shape_cast %17 : vector<1x1x8x4xbf16> to vector<8x4xbf16>
    %cst_21 = arith.constant dense<0.000000e+00> : vector<8x256xf32>
    %19 = tpu.matmul %18, %16, %cst_21 {dimension_numbers = #tpu.dot_dimension_numbers<[1], [0], [0], [1], [0, 0, 1, 1], [], []>} : vector<8x4xbf16>, vector<4x256xbf16>, vector<8x256xf32> -> vector<8x256xf32>
    %20 = arith.addf %14, %19 : vector<8x256xf32>
    %c1_i32 = arith.constant 1 : i32
    %21 = vector.broadcast %c1_i32 : i32 to vector<1x256xi32>
    %22 = arith.cmpi sge, %0, %21 : vector<1x256xi32>
    %c16_i32 = arith.constant 16 : i32
    %23 = vector.broadcast %c16_i32 : i32 to vector<1x256xi32>
    %24 = arith.cmpi slt, %0, %23 : vector<1x256xi32>
    %25 = arith.andi %22, %24 : vector<1x256xi1>
    %cst_22 = arith.constant 0.000000e+00 : f32
    %26 = vector.shape_cast %25 : vector<1x256xi1> to vector<1x256xi1>
    %27 = vector.broadcast %26 : vector<1x256xi1> to vector<8x256xi1>
    %28 = vector.broadcast %cst_22 : f32 to vector<8x256xf32>
    %29 = arith.select %27, %20, %28 : vector<8x256xi1>, vector<8x256xf32>
    %30 = arith.addf %1, %29 : vector<8x256xf32>
    %cst_23 = arith.constant 0.000000e+00 : f32
    %31 = vector.broadcast %cst_23 : f32 to vector<8x256xf32>
    %c0_24 = arith.constant 0 : index
    %c0_25 = arith.constant 0 : index
    %c1_26 = arith.constant 1 : index
    %32 = vector.load %arg1[%c0_24, %c0_25, %c1_26] : memref<1x4x290xbf16, #tpu.memory_space<vmem>>, vector<1x4x256xbf16>
    %33 = vector.shape_cast %32 : vector<1x4x256xbf16> to vector<4x256xbf16>
    %c0_27 = arith.constant 0 : index
    %c1_28 = arith.constant 1 : index
    %c0_29 = arith.constant 0 : index
    %c0_30 = arith.constant 0 : index
    %34 = vector.load %arg4[%c0_27, %c1_28, %c0_29, %c0_30] : memref<3x3x8x4xbf16, #tpu.memory_space<vmem>>, vector<1x1x8x4xbf16>
    %35 = vector.shape_cast %34 : vector<1x1x8x4xbf16> to vector<8x4xbf16>
    %cst_31 = arith.constant dense<0.000000e+00> : vector<8x256xf32>
    %36 = tpu.matmul %35, %33, %cst_31 {dimension_numbers = #tpu.dot_dimension_numbers<[1], [0], [0], [1], [0, 0, 1, 1], [], []>} : vector<8x4xbf16>, vector<4x256xbf16>, vector<8x256xf32> -> vector<8x256xf32>
    %37 = arith.addf %31, %36 : vector<8x256xf32>
    %c0_32 = arith.constant 0 : index
    %c0_33 = arith.constant 0 : index
    %c17 = arith.constant 17 : index
    %38 = vector.load %arg1[%c0_32, %c0_33, %c17] : memref<1x4x290xbf16, #tpu.memory_space<vmem>>, vector<1x4x256xbf16>
    %39 = vector.shape_cast %38 : vector<1x4x256xbf16> to vector<4x256xbf16>
    %c1_34 = arith.constant 1 : index
    %c1_35 = arith.constant 1 : index
    %c0_36 = arith.constant 0 : index
    %c0_37 = arith.constant 0 : index
    %40 = vector.load %arg4[%c1_34, %c1_35, %c0_36, %c0_37] : memref<3x3x8x4xbf16, #tpu.memory_space<vmem>>, vector<1x1x8x4xbf16>
    %41 = vector.shape_cast %40 : vector<1x1x8x4xbf16> to vector<8x4xbf16>
    %cst_38 = arith.constant dense<0.000000e+00> : vector<8x256xf32>
    %42 = tpu.matmul %41, %39, %cst_38 {dimension_numbers = #tpu.dot_dimension_numbers<[1], [0], [0], [1], [0, 0, 1, 1], [], []>} : vector<8x4xbf16>, vector<4x256xbf16>, vector<8x256xf32> -> vector<8x256xf32>
    %43 = arith.addf %37, %42 : vector<8x256xf32>
    %c0_39 = arith.constant 0 : index
    %c0_40 = arith.constant 0 : index
    %c33 = arith.constant 33 : index
    %44 = vector.load %arg1[%c0_39, %c0_40, %c33] : memref<1x4x290xbf16, #tpu.memory_space<vmem>>, vector<1x4x256xbf16>
    %45 = vector.shape_cast %44 : vector<1x4x256xbf16> to vector<4x256xbf16>
    %c2_41 = arith.constant 2 : index
    %c1_42 = arith.constant 1 : index
    %c0_43 = arith.constant 0 : index
    %c0_44 = arith.constant 0 : index
    %46 = vector.load %arg4[%c2_41, %c1_42, %c0_43, %c0_44] : memref<3x3x8x4xbf16, #tpu.memory_space<vmem>>, vector<1x1x8x4xbf16>
    %47 = vector.shape_cast %46 : vector<1x1x8x4xbf16> to vector<8x4xbf16>
    %cst_45 = arith.constant dense<0.000000e+00> : vector<8x256xf32>
    %48 = tpu.matmul %47, %45, %cst_45 {dimension_numbers = #tpu.dot_dimension_numbers<[1], [0], [0], [1], [0, 0, 1, 1], [], []>} : vector<8x4xbf16>, vector<4x256xbf16>, vector<8x256xf32> -> vector<8x256xf32>
    %49 = arith.addf %43, %48 : vector<8x256xf32>
    %50 = arith.addf %30, %49 : vector<8x256xf32>
    %cst_46 = arith.constant 0.000000e+00 : f32
    %51 = vector.broadcast %cst_46 : f32 to vector<8x256xf32>
    %c0_47 = arith.constant 0 : index
    %c0_48 = arith.constant 0 : index
    %c2_49 = arith.constant 2 : index
    %52 = vector.load %arg1[%c0_47, %c0_48, %c2_49] : memref<1x4x290xbf16, #tpu.memory_space<vmem>>, vector<1x4x256xbf16>
    %53 = vector.shape_cast %52 : vector<1x4x256xbf16> to vector<4x256xbf16>
    %c0_50 = arith.constant 0 : index
    %c2_51 = arith.constant 2 : index
    %c0_52 = arith.constant 0 : index
    %c0_53 = arith.constant 0 : index
    %54 = vector.load %arg4[%c0_50, %c2_51, %c0_52, %c0_53] : memref<3x3x8x4xbf16, #tpu.memory_space<vmem>>, vector<1x1x8x4xbf16>
    %55 = vector.shape_cast %54 : vector<1x1x8x4xbf16> to vector<8x4xbf16>
    %cst_54 = arith.constant dense<0.000000e+00> : vector<8x256xf32>
    %56 = tpu.matmul %55, %53, %cst_54 {dimension_numbers = #tpu.dot_dimension_numbers<[1], [0], [0], [1], [0, 0, 1, 1], [], []>} : vector<8x4xbf16>, vector<4x256xbf16>, vector<8x256xf32> -> vector<8x256xf32>
    %57 = arith.addf %51, %56 : vector<8x256xf32>
    %c0_55 = arith.constant 0 : index
    %c0_56 = arith.constant 0 : index
    %c18 = arith.constant 18 : index
    %58 = vector.load %arg1[%c0_55, %c0_56, %c18] : memref<1x4x290xbf16, #tpu.memory_space<vmem>>, vector<1x4x256xbf16>
    %59 = vector.shape_cast %58 : vector<1x4x256xbf16> to vector<4x256xbf16>
    %c1_57 = arith.constant 1 : index
    %c2_58 = arith.constant 2 : index
    %c0_59 = arith.constant 0 : index
    %c0_60 = arith.constant 0 : index
    %60 = vector.load %arg4[%c1_57, %c2_58, %c0_59, %c0_60] : memref<3x3x8x4xbf16, #tpu.memory_space<vmem>>, vector<1x1x8x4xbf16>
    %61 = vector.shape_cast %60 : vector<1x1x8x4xbf16> to vector<8x4xbf16>
    %cst_61 = arith.constant dense<0.000000e+00> : vector<8x256xf32>
    %62 = tpu.matmul %61, %59, %cst_61 {dimension_numbers = #tpu.dot_dimension_numbers<[1], [0], [0], [1], [0, 0, 1, 1], [], []>} : vector<8x4xbf16>, vector<4x256xbf16>, vector<8x256xf32> -> vector<8x256xf32>
    %63 = arith.addf %57, %62 : vector<8x256xf32>
    %c0_62 = arith.constant 0 : index
    %c0_63 = arith.constant 0 : index
    %c34 = arith.constant 34 : index
    %64 = vector.load %arg1[%c0_62, %c0_63, %c34] : memref<1x4x290xbf16, #tpu.memory_space<vmem>>, vector<1x4x256xbf16>
    %65 = vector.shape_cast %64 : vector<1x4x256xbf16> to vector<4x256xbf16>
    %c2_64 = arith.constant 2 : index
    %c2_65 = arith.constant 2 : index
    %c0_66 = arith.constant 0 : index
    %c0_67 = arith.constant 0 : index
    %66 = vector.load %arg4[%c2_64, %c2_65, %c0_66, %c0_67] : memref<3x3x8x4xbf16, #tpu.memory_space<vmem>>, vector<1x1x8x4xbf16>
    %67 = vector.shape_cast %66 : vector<1x1x8x4xbf16> to vector<8x4xbf16>
    %cst_68 = arith.constant dense<0.000000e+00> : vector<8x256xf32>
    %68 = tpu.matmul %67, %65, %cst_68 {dimension_numbers = #tpu.dot_dimension_numbers<[1], [0], [0], [1], [0, 0, 1, 1], [], []>} : vector<8x4xbf16>, vector<4x256xbf16>, vector<8x256xf32> -> vector<8x256xf32>
    %69 = arith.addf %63, %68 : vector<8x256xf32>
    %c0_i32 = arith.constant 0 : i32
    %70 = vector.broadcast %c0_i32 : i32 to vector<1x256xi32>
    %71 = arith.cmpi sge, %0, %70 : vector<1x256xi32>
    %c15_i32 = arith.constant 15 : i32
    %72 = vector.broadcast %c15_i32 : i32 to vector<1x256xi32>
    %73 = arith.cmpi slt, %0, %72 : vector<1x256xi32>
    %74 = arith.andi %71, %73 : vector<1x256xi1>
    %cst_69 = arith.constant 0.000000e+00 : f32
    %75 = vector.shape_cast %74 : vector<1x256xi1> to vector<1x256xi1>
    %76 = vector.broadcast %75 : vector<1x256xi1> to vector<8x256xi1>
    %77 = vector.broadcast %cst_69 : f32 to vector<8x256xf32>
    %78 = arith.select %76, %69, %77 : vector<8x256xi1>, vector<8x256xf32>
    %79 = arith.addf %50, %78 : vector<8x256xf32>
    %c0_70 = arith.constant 0 : index
    %c0_71 = arith.constant 0 : index
    %c0_72 = arith.constant 0 : index
    %80 = vector.load %arg2[%c0_70, %c0_71, %c0_72] : memref<1x1x256xf32, #tpu.memory_space<vmem>>, vector<1x1x256xf32>
    %81 = vector.shape_cast %80 : vector<1x1x256xf32> to vector<1x256xf32>
    %cst_73 = arith.constant 0.000000e+00 : f32
    %82 = vector.broadcast %cst_73 : f32 to vector<1x256xf32>
    %83 = arith.cmpf oeq, %81, %82 : vector<1x256xf32>
    %cst_74 = arith.constant 1.000000e+00 : f32
    %84 = vector.broadcast %cst_74 : f32 to vector<1x256xf32>
    %85 = arith.select %83, %84, %81 : vector<1x256xi1>, vector<1x256xf32>
    %86 = tpu.reciprocal %85 {approx = true} : vector<1x256xf32> -> vector<1x256xf32>
    %87 = arith.mulf %85, %86 : vector<1x256xf32>
    %cst_75 = arith.constant 2.000000e+00 : f32
    %88 = vector.broadcast %cst_75 : f32 to vector<1x256xf32>
    %89 = arith.subf %88, %87 : vector<1x256xf32>
    %90 = arith.mulf %86, %89 : vector<1x256xf32>
    %91 = vector.broadcast %90 : vector<1x256xf32> to vector<8x256xf32>
    %92 = arith.mulf %79, %91 : vector<8x256xf32>
    %c0_76 = arith.constant 0 : index
    %c0_77 = arith.constant 0 : index
    %93 = vector.load %arg5[%c0_76, %c0_77] : memref<8x1xf32, #tpu.memory_space<vmem>>, vector<8x1xf32>
    %94 = vector.broadcast %93 : vector<8x1xf32> to vector<8x256xf32>
    %95 = arith.addf %92, %94 : vector<8x256xf32>
    %cst_78 = arith.constant 0.000000e+00 : f32
    %96 = vector.shape_cast %83 : vector<1x256xi1> to vector<1x256xi1>
    %97 = vector.broadcast %96 : vector<1x256xi1> to vector<8x256xi1>
    %98 = vector.broadcast %cst_78 : f32 to vector<8x256xf32>
    %99 = arith.select %97, %98, %95 : vector<8x256xi1>, vector<8x256xf32>
    %c0_79 = arith.constant 0 : index
    %c0_80 = arith.constant 0 : index
    %c0_81 = arith.constant 0 : index
    %100 = vector.load %arg6[%c0_79, %c0_80, %c0_81] : memref<1x8x256xf32, #tpu.memory_space<vmem>>, vector<1x8x256xf32>
    %101 = vector.shape_cast %100 : vector<1x8x256xf32> to vector<8x256xf32>
    %102 = vector.shape_cast %99 : vector<8x256xf32> to vector<1x8x256xf32>
    tpu.vector_store %arg6[%c0_79, %c0_80, %c0_81], %102 {strides = array<i32>} : memref<1x8x256xf32, #tpu.memory_space<vmem>>, vector<1x8x256xf32>,
    return
  }
  func.func @transform_0(%arg0: i32) -> (i32, i32, i32) {
    %c0_i32 = arith.constant 0 : i32
    %c0_i32_0 = arith.constant 0 : i32
    %c0_i32_1 = arith.constant 0 : i32
    return %arg0, %c0_i32, %c0_i32_0 : i32, i32, i32
  }
  func.func @transform_1(%arg0: i32) -> (i32, i32, i32) {
    %c0_i32 = arith.constant 0 : i32
    %c0_i32_0 = arith.constant 0 : i32
    %c0_i32_1 = arith.constant 0 : i32
    return %arg0, %c0_i32, %c0_i32_0 : i32, i32, i32
  }
  func.func @transform_2(%arg0: i32) -> (i32, i32) {
    %c0_i32 = arith.constant 0 : i32
    %c0_i32_0 = arith.constant 0 : i32
    %c0_i32_1 = arith.constant 0 : i32
    return %c0_i32, %c0_i32_0 : i32, i32
  }
  func.func @transform_3(%arg0: i32) -> (i32, i32, i32, i32) {
    %c0_i32 = arith.constant 0 : i32
    %c0_i32_0 = arith.constant 0 : i32
    %c0_i32_1 = arith.constant 0 : i32
    %c0_i32_2 = arith.constant 0 : i32
    %c0_i32_3 = arith.constant 0 : i32
    return %c0_i32, %c0_i32_0, %c0_i32_1, %c0_i32_2 : i32, i32, i32, i32
  }
  func.func @transform_4(%arg0: i32) -> (i32, i32) {
    %c0_i32 = arith.constant 0 : i32
    %c0_i32_0 = arith.constant 0 : i32
    %c0_i32_1 = arith.constant 0 : i32
    return %c0_i32, %c0_i32_0 : i32, i32
  }
  func.func @transform_5(%arg0: i32) -> (i32, i32, i32) {
    %c0_i32 = arith.constant 0 : i32
    %c0_i32_0 = arith.constant 0 : i32
    %c0_i32_1 = arith.constant 0 : i32
    return %arg0, %c0_i32, %c0_i32_0 : i32, i32, i32
  }
}

</mosaic_0001>

<bundles_post_ra>
// kernel: tile.9
= control target key start
LH: loop header
LB: loop body
LE: loop exit
PB: predicated region body
PF: predicated region fallthrough
CT: control target
= control target key end

     0   :  { %s7_s6 = smov 3  ;;  %s21_s9 = smov 3  ;;  %vm4_vm0 = vcmask 130048   ;;  %vm11_vm1 = vcmask 1048448   ;;  %vm18_vm2 = vcmask 917248   ;;  %vm25_vm3 = vcmask 786048   ;;  %s129_s0 = inlined_call_operand.vmem [shape: s32[16,16], index: 0, kind: input, shape index: {}]   ;;  %s130_s1 = inlined_call_operand.vmem [shape: s32[1,256], index: 1, kind: output, shape index: {}]  }
   0x1   :  { %v67_v0 = vld [vmem:[%s129_s0 + $0x7] ss:$8 sm:%s7_s6]   ;;  %s82_s10 = smov 112   ;;  %v69_v1 = vld [vmem:[%s129_s0 + $0x5] ss:$8 sm:%s21_s9]   ;;  %s83_s13 = smov 80  }
   0x2   :  { %9 = vrot.lane.b32.xlu0 %v67_v0, %s82_s10  ;;  %23 = vrot.lane.b32.xlu1 %v69_v1, %s83_s13  ;;  %s14_s14 = smov 3  ;;  %s28_s15 = smov 3  ;;  %vm32_vm4 = vcmask 654848   ;;  %vm39_vm5 = vcmask 523648   ;;  %vm46_vm6 = vcmask 392448   ;;  %vm53_vm7 = vcmask 261248  }
   0x3   :  { %s35_s16 = smov 3  ;;  %v68_v3 = vld [vmem:[%s129_s0 + $0x6] ss:$8 sm:%s14_s14]   ;;  %s84_s21 = smov 48   ;;  %v70_v4 = vld [vmem:[%s129_s0 + $0x4] ss:$8 sm:%s28_s15]  }
   0x4   :  { %v71_v2 = vld [vmem:[%s129_s0 + $0x3] ss:$8 sm:%s35_s16]   ;;  %s42_s24 = smov 3  ;;  %s85_s25 = smov 96  }
   0x5   :  { %37 = vrot.lane.b32.xlu2 %v71_v2, %s84_s21  ;;  %s86_s26 = smov 64   ;;  %s49_s27 = smov 3  ;;  %v72_v5 = vld [vmem:[%s129_s0 + $0x2] ss:$8 sm:%s42_s24]  }
   0x6   :  { %v73_v6 = vld [vmem:[%s129_s0 + $0x1] ss:$8 sm:%s49_s27]   ;;  %s87_s3 = smov 32   ;;  %s88_s4 = smov 16  }
   0x7   :  { %s2_s5 = smov 3 }
   0x8   :  { %v3_v7 = vld [vmem:[%s129_s0] ss:$8 sm:%s2_s5]  }
   0x9   :  { %5 = vst.msk [vmem:[#allocation0] ss:$8 sm:$0x3] %vm4_vm0, %v3_v7  }
   0xa   :  { %16 = vrot.lane.b32.xlu0 %v68_v3, %s85_s25  ;;  %30 = vrot.lane.b32.xlu1 %v70_v4, %s86_s26 }
   0xd   :  { %44 = vrot.lane.b32.xlu2 %v72_v5, %s87_s3 }
  0x12   :  { %51 = vrot.lane.b32.xlu0 %v73_v6, %s88_s4 }
  0x5f   :  { %v38_v8 = vpop.permute.xlu2 %37  }
  0x67   :  { %v45_v9 = vpop.permute.xlu2 %44  }
  0x74   :  { %v10_v10 = vpop.permute.xlu0 %9   ;;  %v24_v11 = vpop.permute.xlu1 %23  }
  0x75   :  { %12 = vst.msk [vmem:[#allocation0] ss:$8 sm:$0x3] %vm11_vm1, %v10_v10  }
  0x7c   :  { %v17_v12 = vpop.permute.xlu0 %16   ;;  %v31_v13 = vpop.permute.xlu1 %30  }
  0x7d   :  { %19 = vst.msk [vmem:[#allocation0] ss:$8 sm:$0x3] %vm18_vm2, %v17_v12  }
  0x7e   :  { %26 = vst.msk [vmem:[#allocation0] ss:$8 sm:$0x3] %vm25_vm3, %v24_v11  }
  0x7f   :  { %33 = vst.msk [vmem:[#allocation0] ss:$8 sm:$0x3] %vm32_vm4, %v31_v13  }
  0x80   :  { %40 = vst.msk [vmem:[#allocation0] ss:$8 sm:$0x3] %vm39_vm5, %v38_v8  }
  0x81   :  { %47 = vst.msk [vmem:[#allocation0] ss:$8 sm:$0x3] %vm46_vm6, %v45_v9  }
  0x84   :  { %v52_v14 = vpop.permute.xlu0 %51  }
  0x85   :  { %54 = vst.msk [vmem:[#allocation0] ss:$8 sm:$0x3] %vm53_vm7, %v52_v14  }
  0x8c   :  { %v57_v15 = vld [vmem:[#allocation0] sm:$0x1]  ;;  %v62_v16 = vld [vmem:[#allocation0 + $0x8] sm:$0x1] }
  0x8d   :  { %60 = vst [vmem:[%s130_s1] sm:$0x1] %v57_v15 }
  0x8e   :  { %74 = vst [vmem:[%s130_s1 + $0x1] sm:$0x1] %v62_v16 }

// kernel: partial_conv.1
= control target key start
LH: loop header
LB: loop body
LE: loop exit
PB: predicated region body
PF: predicated region fallthrough
CT: control target
= control target key end

     0   :  { %s957_s18 = smov 0   ;;  %s1080_s0 = inlined_call_operand.vmem [shape: bf16[2,4,290], index: 0, kind: input, shape index: {}]   ;;  %s1081_s1 = inlined_call_operand.vmem [shape: f32[2,1,256], index: 1, kind: input, shape index: {}]   ;;  %s1082_s2 = inlined_call_operand.vmem [shape: s32[1,256], index: 2, kind: input, shape index: {}]   ;;  %s1083_s3 = inlined_call_operand.vmem [shape: bf16[3,3,8,4], index: 3, kind: input, shape index: {}]   ;;  %s1084_s4 = inlined_call_operand.vmem [shape: f32[8,1], index: 4, kind: input, shape index: {}]   ;;  %s1085_s5 = inlined_call_operand.vmem [shape: f32[2,8,256], index: 5, kind: output, shape index: {}]  }
   0x1 LB: > { %s851_s19 = sadd.s32 4294967295, %s916_s18   ;;  %p855_p0 = scmp.ge.s32.totalorder %s916_s18, 1  ;;  %s916_s18 = sphi %s957_s18, %s15_s18  }
   0x2   : > { %p196_p1 = scmp.lt.s32.totalorder %s916_s18, 3 }
   0x4   : > { %p197_p2 = pnand %p855_p0, %p196_p1 }
   0x5   : > { %p228_p3 = scmp.lt.s32.totalorder (!%p197_p2), %s851_s19, 1  ;;  %s918_s24 = smov (!%p197_p2), 112  }
   0x6   : > { %200 = sbr.rel (%p197_p2) target bundleno = 354 (0x162), region = 40  ;;  %s919_s25 = smov (!%p197_p2), 96  }
   0x7   : > { %s920_s26 = smov (!%p197_p2), 111   ;;  %s921_s27 = smov (!%p197_p2), 127  }
   0x8   : > { %s922_s28 = smov (!%p197_p2), 95   ;;  %s923_s29 = smov (!%p197_p2), 110  }
   0x9   : > { %s924_s30 = smov (!%p197_p2), 126   ;;  %s925_s6 = smov (!%p197_p2), 94  }
   0xb   : > { %s1089_s19 = smov (!%p228_p3, %s851_s19), 1  ;;  %vm270_vm0 = vcmask 1041408   ;;  %v245_v35 = vld [vmem:[%s1083_s3] sm:$0xf]  ;;  %vm266_vm1 = vcmask 31744   ;;  %vm357_vm2 = vcmask 785408  }
   0xc   : > { %s889_s20 = smul.u32 6, %s1089_s19  ;;  %vm263_vm3 = vcmask 916480   ;;  %v860_v47 = vld [vmem:[%s1083_s3 + $0xc] sm:$0xf]  ;;  %vm428_vm4 = vcmask 908288   ;;  %vm479_vm5 = vcmask 1039360  }
   0xd   : > { %v865_v55 = vld [vmem:[%s1083_s3 + $0x18] sm:$0xf]  ;;  %v869_v59 = vld [vmem:[%s1083_s3 + $0x10] sm:$0xf]  ;;  %vm534_vm6 = vcmask 777216   ;;  %vm595_vm7 = vcmask 900096  }
   0xe   : > { %s971_s23 = scalar_lea.vmem %s1080_s0, %s889_s20  ;;  %vm646_vm8 = vcmask 1031168   ;;  %vm701_vm9 = vcmask 769024   ;;  %s888_s10 = sshll.u32 %s1089_s19, 4 }
   0xf   : > { %v246_v0 = vld [vmem:[%s971_s23] sm:$0x3f]  ;;  %s241_s13 = scalar_lea.vmem %s1085_s5, %s888_s10 }
  0x10   : > { %250 = vst [vmem:[#allocation1] ss:$4 sm:$0xff] %v246_v0  ;;  %v244_v1 = vld [vmem:[%s971_s23] sm:$0xf] }
  0x11   : > { %v340_v5 = vld [vmem:[%s971_s23] sm:$0x3f] }
  0x12   : > { %v409_v8 = vld [vmem:[%s971_s23] sm:$0x3f] }
  0x13   : > { %v517_v15 = vld [vmem:[%s971_s23] sm:$0x3f] }
  0x14   : > { %v576_v19 = vld [vmem:[%s971_s23] sm:$0x3f] }
  0x15   : > { %v684_v26 = vld [vmem:[%s971_s23] sm:$0x3f] }
  0x17   : > { %v251_v2 = vld.sshfl [vmem:[#allocation1] sm:$0xff pattern:$0x73625140]  ;;  %v255_v3 = vld.sshfl [vmem:[#allocation1 + $0x10] sm:$0xff pattern:$0x73625140] }
  0x18   : > { %257 = vrot.lane.b32.xlu0 %v251_v2, %s918_s24  ;;  %261 = vrot.lane.b32.xlu1 %v255_v3, %s918_s24  ;;  %v253_v4 = vld.sshfl [vmem:[#allocation1 + $0x8] sm:$0xff pattern:$0x73625140] }
  0x19   : > { %304 = vst [vmem:[#allocation1] ss:$4 sm:$0xff] %v244_v1 }
  0x20   : > { %259 = vrot.lane.b32.xlu0 %v253_v4, %s918_s24  ;;  %v976_v6 = vld.sshfl [vmem:[#allocation1] sm:$0xff pattern:$0x73625140]  ;;  %v978_v7 = vld.sshfl [vmem:[#allocation1 + $0x8] sm:$0xff pattern:$0x73625140] }
  0x21   : > { %344 = vst [vmem:[#allocation1] ss:$4 sm:$0xff] %v340_v5  ;;  %v310_v33 = vsel %vm270_vm0, %v976_v6, 0  ;;  %v312_v34 = vsel %vm270_vm0, %v978_v7, 0  ;;  %v868_v4 = vld [vmem:[%s1083_s3 + $0x4] sm:$0xf] }
  0x22   : > { %321 = vmatpush.bf16.msra.mxu2 %v310_v33  ;;  %334 = vmatpush.bf16.msra.mxu3 %v312_v34 }
  0x25   : > { %863 = vmatmul.msk.bf16.vlgmr.msra.gmra.mxu2 %vm266_vm1, %v245_v35  ;;  %864 = vmatmul.msk.bf16.vlgmr.msra.gmra.mxu3 %vm266_vm1, %v245_v35 }
  0x28   : > { %v345_v9 = vld.sshfl [vmem:[#allocation1] sm:$0xff pattern:$0x73625140]  ;;  %v347_v10 = vld.sshfl [vmem:[#allocation1 + $0x8] sm:$0xff pattern:$0x73625140] }
  0x29   : > { %351 = vrot.lane.b32.xlu1 %v345_v9, %s919_s25  ;;  %v349_v11 = vld.sshfl [vmem:[#allocation1 + $0x10] sm:$0xff pattern:$0x73625140]  ;;  %353 = vrot.lane.b32.xlu2 %v347_v10, %s919_s25 }
  0x2a   : > { %415 = vst [vmem:[#allocation1] ss:$4 sm:$0xff] %v409_v8 }
  0x31   : > { %v420_v12 = vld.sshfl [vmem:[#allocation1 + $0x10] sm:$0xff pattern:$0x73625140]  ;;  %v418_v13 = vld.sshfl [vmem:[#allocation1 + $0x8] sm:$0xff pattern:$0x73625140]  ;;  %355 = vrot.lane.b32.xlu2 %v349_v11, %s919_s25 }
  0x32   : > { %424 = vrot.lane.b32.xlu1 %v418_v13, %s920_s26  ;;  %v416_v14 = vld.sshfl [vmem:[#allocation1] sm:$0xff pattern:$0x73625140]  ;;  %v874_v11 = vld [vmem:[%s1083_s3 + $0x1c] sm:$0xf]  ;;  %v926_v13 = vmov 0  }
  0x33   : > { %422 = vrot.lane.b32.xlu0 %v416_v14, %s920_s26  ;;  %466 = vst [vmem:[#allocation1] ss:$4 sm:$0xff] %v409_v8 }
  0x34   : > { %907 = vset.pattern.permute.xlu0 %v926_v13 }
  0x39   : > { %426 = vrot.lane.b32.xlu2 %v420_v12, %s920_s26  ;;  %v767_v12 = vld [vmem:[%s1084_s4] sm:$0xff] }
  0x3a   : > { %v469_v16 = vld.sshfl [vmem:[#allocation1 + $0x8] sm:$0xff pattern:$0x73625140]  ;;  %v471_v17 = vld.sshfl [vmem:[#allocation1 + $0x10] sm:$0xff pattern:$0x73625140] }
  0x3b   : > { %475 = vrot.lane.b32.xlu1 %v469_v16, %s921_s27  ;;  %v467_v18 = vld.sshfl [vmem:[#allocation1] sm:$0xff pattern:$0x73625140] }
  0x3c   : > { %473 = vrot.lane.b32.xlu0 %v467_v18, %s921_s27  ;;  %521 = vst [vmem:[#allocation1] ss:$4 sm:$0xff] %v517_v15 }
  0x41   : > { %477 = vrot.lane.b32.xlu2 %v471_v17, %s921_s27 }
  0x43   : > { %v524_v20 = vld.sshfl [vmem:[#allocation1 + $0x8] sm:$0xff pattern:$0x73625140]  ;;  %v526_v21 = vld.sshfl [vmem:[#allocation1 + $0x10] sm:$0xff pattern:$0x73625140] }
  0x44   : > { %530 = vrot.lane.b32.xlu1 %v524_v20, %s922_s28  ;;  %v522_v22 = vld.sshfl [vmem:[#allocation1] sm:$0xff pattern:$0x73625140] }
  0x45   : > { %528 = vrot.lane.b32.xlu0 %v522_v22, %s922_s28  ;;  %582 = vst [vmem:[#allocation1] ss:$4 sm:$0xff] %v576_v19 }
  0x49   : > { %532 = vrot.lane.b32.xlu2 %v526_v21, %s922_s28  ;;  %v878_v21 = vld [vmem:[%s1083_s3 + $0x14] sm:$0xf] }
  0x4c   : > { %v585_v23 = vld.sshfl [vmem:[#allocation1 + $0x8] sm:$0xff pattern:$0x73625140]  ;;  %v587_v24 = vld.sshfl [vmem:[#allocation1 + $0x10] sm:$0xff pattern:$0x73625140] }
  0x4d   : > { %591 = vrot.lane.b32.xlu1 %v585_v23, %s923_s29  ;;  %v583_v25 = vld.sshfl [vmem:[#allocation1] sm:$0xff pattern:$0x73625140] }
  0x4e   : > { %589 = vrot.lane.b32.xlu0 %v583_v25, %s923_s29  ;;  %633 = vst [vmem:[#allocation1] ss:$4 sm:$0xff] %v576_v19 }
  0x51   : > { %593 = vrot.lane.b32.xlu2 %v587_v24, %s923_s29  ;;  %s857_s29 = sshll.u32 %s1089_s19, 1 }
  0x52   : > { %s236_s7 = scalar_lea.vmem %s1081_s1, %s857_s29 }
  0x55   : > { %v638_v27 = vld.sshfl [vmem:[#allocation1 + $0x10] sm:$0xff pattern:$0x73625140]  ;;  %v636_v28 = vld.sshfl [vmem:[#allocation1 + $0x8] sm:$0xff pattern:$0x73625140] }
  0x56   : > { %642 = vrot.lane.b32.xlu1 %v636_v28, %s924_s30  ;;  %v634_v29 = vld.sshfl [vmem:[#allocation1] sm:$0xff pattern:$0x73625140] }
  0x57   : > { %640 = vrot.lane.b32.xlu0 %v634_v29, %s924_s30  ;;  %688 = vst [vmem:[#allocation1] ss:$4 sm:$0xff] %v684_v26  ;;  %v877_v29 = vld [vmem:[%s1083_s3 + $0x8] sm:$0xf] }
  0x59   : > { %644 = vrot.lane.b32.xlu2 %v638_v27, %s924_s30 }
  0x5e   : > { %v691_v30 = vld.sshfl [vmem:[#allocation1 + $0x8] sm:$0xff pattern:$0x73625140]  ;;  %v689_v31 = vld.sshfl [vmem:[#allocation1] sm:$0xff pattern:$0x73625140] }
  0x5f   : > { %697 = vrot.lane.b32.xlu1 %v691_v30, %s925_s6  ;;  %695 = vrot.lane.b32.xlu0 %v689_v31, %s925_s6  ;;  %v693_v32 = vld.sshfl [vmem:[#allocation1 + $0x10] sm:$0xff pattern:$0x73625140] }
  0x61   : > { %699 = vrot.lane.b32.xlu2 %v693_v32, %s925_s6 }
  0x67   : > { %770 = vperm.xlu0 %907, %v767_v12  }
  0x83   : > { %v354_v36 = vpop.permute.xlu2 %353 }
  0x8a   : > { %v258_v37 = vpop.permute.xlu0 %257  ;;  %v262_v39 = vpop.permute.xlu1 %261 }
  0x8b   : > { %v356_v38 = vpop.permute.xlu2 %355 }
  0x8c   : > { %v359_v40 = vsel %vm357_vm2, %v354_v36, %v356_v38 }
  0x8d   : > { %v367_v44 = vsel %vm270_vm0, %v359_v40, 0 }
  0x92   : > { %v260_v41 = vpop.permute.xlu0 %259 }
  0x93   : > { %v264_v42 = vsel %vm263_vm3, %v258_v37, %v260_v41  ;;  %v265_v43 = vsel %vm263_vm3, %v260_v41, %v262_v39  ;;  %v427_v51 = vpop.permute.xlu2 %426  ;;  %v883_v37 = vld [vmem:[%s1083_s3 + $0x20] sm:$0xf] }
  0x94   : > { %v272_v45 = vsel %vm270_vm0, %v264_v42, 0  ;;  %v275_v46 = vsel %vm270_vm0, %v265_v43, 0 }
  0x95   : > { %284 = vmatpush.bf16.msra.mxu0 %v272_v45  ;;  %297 = vmatpush.bf16.msra.mxu1 %v275_v46 }
  0x98   : > { %861 = vmatmul.msk.bf16.vlgmr.msra.gmra.mxu0 %vm266_vm1, %v860_v47  ;;  %862 = vmatmul.msk.bf16.vlgmr.msra.gmra.mxu1 %vm266_vm1, %v860_v47 }
  0x99   : > { %389 = vmatpush.bf16.msrb.mxu1 %v367_v44 }
  0x9b   : > { %v352_v48 = vpop.permute.xlu1 %351  ;;  %v478_v60 = vpop.permute.xlu2 %477 }
  0x9c   : > { %v358_v49 = vsel %vm357_vm2, %v352_v48, %v354_v36 }
  0x9d   : > { %v364_v50 = vsel %vm270_vm0, %v358_v49, 0 }
  0x9e   : > { %376 = vmatpush.bf16.msrb.mxu0 %v364_v50 }
  0xa3   : > { %v533_v3 = vpop.permute.xlu2 %532 }
  0xa4   : > { %v425_v52 = vpop.permute.xlu1 %424 }
  0xa5   : > { %v423_v53 = vpop.permute.xlu0 %422  ;;  %v430_v54 = vsel %vm428_vm4, %v425_v52, %v427_v51 }
  0xa6   : > { %v429_v56 = vsel %vm428_vm4, %v423_v53, %v425_v52  ;;  %v438_v57 = vsel %vm270_vm0, %v430_v54, 0 }
  0xa7   : > { %v435_v58 = vsel %vm270_vm0, %v429_v56, 0  ;;  %460 = vmatpush.bf16.msrb.mxu3 %v438_v57  ;;  %v753_v56 = vld [vmem:[%s236_s7] sm:$0x3] }
  0xa8   : > { %447 = vmatpush.bf16.msrb.mxu2 %v435_v58  ;;  %866 = vmatmul.msk.bf16.vlgmr.msrb.gmra.mxu0 %vm266_vm1, %v865_v55  ;;  %v323_v38 = vpop.f32.mrf.mxu2  ;;  %v336_v39 = vpop.f32.mrf.mxu3  ;;  %vm754_vm10 = vcmp.eq.f32.partialorder %v753_v56, 0.0 }
  0xa9   : > { %867 = vmatmul.msk.bf16.vlgmr.msrb.gmra.mxu1 %vm266_vm1, %v865_v55 }
  0xaa   : > { %871 = vmatmul.msk.bf16.vlgmr.msrb.gmra.mxu3 %vm266_vm1, %v869_v59 }
  0xab   : > { %870 = vmatmul.msk.bf16.vlgmr.msrb.gmra.mxu2 %vm266_vm1, %v869_v59  ;;  %v594_v14 = vpop.permute.xlu2 %593 }
  0xad   : > { %v476_v61 = vpop.permute.xlu1 %475 }
  0xae   : > { %v481_v62 = vsel %vm479_vm5, %v476_v61, %v478_v60  ;;  %v474_v63 = vpop.permute.xlu0 %473  ;;  %v755_v60 = vsel %vm754_vm10, 1.0, %v753_v56 }
  0xaf   : > { %v489_v0 = vsel %vm270_vm0, %v481_v62, 0  ;;  %v480_v1 = vsel %vm479_vm5, %v474_v63, %v476_v61  ;;  %908 = vrcp.f32 %v755_v60  ;;  %v243_v62 = vld [vmem:[%s1082_s2] sm:$0x3] }
  0xb0   : > { %v486_v2 = vsel %vm270_vm0, %v480_v1, 0  ;;  %511 = vmatpush.bf16.msra.mxu1 %v489_v0  ;;  %v325_v40 = vpop.f32.mrf.mxu2  ;;  %v338_v41 = vpop.f32.mrf.mxu3  ;;  %vm397_vm11 = vcmp.ge.s32.totalorder %v243_v62, 1  ;;  %vm398_vm12 = vcmp.lt.s32.totalorder %v243_v62, 16  ;;  %vm741_vm13 = vcmp.ge.s32.totalorder %v243_v62, 0 }
  0xb1   : > { %498 = vmatpush.bf16.msra.mxu0 %v486_v2  ;;  %vm742_vm14 = vcmp.lt.s32.totalorder %v243_v62, 15  ;;  %vm399_vm15 = vmand %vm397_vm11, %vm398_vm12 }
  0xb3   : > { %v645_v22 = vpop.permute.xlu2 %644 }
  0xb5   : > { %v909_v2 = vpop.eup %908 }
  0xb6   : > { %v531_v5 = vpop.permute.xlu1 %530 }
  0xb7   : > { %v536_v6 = vsel %vm534_vm6, %v531_v5, %v533_v3  ;;  %v529_v7 = vpop.permute.xlu0 %528 }
  0xb8   : > { %v544_v8 = vsel %vm270_vm0, %v536_v6, 0  ;;  %v535_v9 = vsel %vm534_vm6, %v529_v7, %v531_v5  ;;  %872 = vmatmul.msk.bf16.vlgmr.msra.gmra.mxu0 %vm266_vm1, %v868_v4  ;;  %v400_v5 = vsel %vm399_vm15, 1, %v926_v13 }
  0xb9   : > { %v541_v10 = vsel %vm270_vm0, %v535_v9, 0  ;;  %566 = vmatpush.bf16.msra.mxu3 %v544_v8  ;;  %873 = vmatmul.msk.bf16.vlgmr.msra.gmra.mxu1 %vm266_vm1, %v868_v4  ;;  %v757_v4 = vmul.f32 %v909_v2, %v755_v60  ;;  %v401_v9 = vperm.slane %v400_v5, 0  ;;  %v402_v12 = vperm.slane %v400_v5, 1 }
  0xba   : > { %553 = vmatpush.bf16.msra.mxu2 %v541_v10 }
  0xbb   : > { %v700_v30 = vpop.permute.xlu2 %699  ;;  %v758_v10 = vsub.f32 2.0, %v757_v4  ;;  %vm404_vm2 = vcmp.eq.s32.totalorder %v402_v12, 1 }
  0xbc   : > { %876 = vmatmul.msk.bf16.vlgmr.msra.gmra.mxu3 %vm266_vm1, %v874_v11 }
  0xbd   : > { %875 = vmatmul.msk.bf16.vlgmr.msra.gmra.mxu2 %vm266_vm1, %v874_v11 }
  0xbf   : > { %v592_v15 = vpop.permute.xlu1 %591 }
  0xc0   : > { %v597_v16 = vsel %vm595_vm7, %v592_v15, %v594_v14  ;;  %v590_v17 = vpop.permute.xlu0 %589 }
  0xc1   : > { %v605_v18 = vsel %vm270_vm0, %v597_v16, 0  ;;  %v596_v19 = vsel %vm595_vm7, %v590_v17, %v592_v15 }
  0xc2   : > { %v602_v20 = vsel %vm270_vm0, %v596_v19, 0  ;;  %627 = vmatpush.bf16.msrb.mxu1 %v605_v18 }
  0xc3   : > { %614 = vmatpush.bf16.msrb.mxu0 %v602_v20 }
  0xc8   : > { %v643_v23 = vpop.permute.xlu1 %642  ;;  %879 = vmatmul.msk.bf16.vlgmr.msrb.gmra.mxu0 %vm266_vm1, %v878_v21 }
  0xc9   : > { %v648_v24 = vsel %vm646_vm8, %v643_v23, %v645_v22  ;;  %v641_v25 = vpop.permute.xlu0 %640  ;;  %880 = vmatmul.msk.bf16.vlgmr.msrb.gmra.mxu1 %vm266_vm1, %v878_v21 }
  0xca   : > { %v656_v26 = vsel %vm270_vm0, %v648_v24, 0  ;;  %v647_v27 = vsel %vm646_vm8, %v641_v25, %v643_v23  ;;  %v759_v25 = vmul.f32 %v909_v2, %v758_v10 }
  0xcb   : > { %v653_v28 = vsel %vm270_vm0, %v647_v27, 0  ;;  %678 = vmatpush.bf16.msrb.mxu3 %v656_v26 }
  0xcc   : > { %665 = vmatpush.bf16.msrb.mxu2 %v653_v28  ;;  %v762_v40 = vperm.slane %v759_v25, 1 }
  0xce   : > { %882 = vmatmul.msk.bf16.vlgmr.msrb.gmra.mxu3 %vm266_vm1, %v877_v29 }
  0xcf   : > { %881 = vmatmul.msk.bf16.vlgmr.msrb.gmra.mxu2 %vm266_vm1, %v877_v29 }
  0xd1   : > { %v698_v31 = vpop.permute.xlu1 %697  ;;  %v696_v32 = vpop.permute.xlu0 %695 }
  0xd2   : > { %v703_v33 = vsel %vm701_vm9, %v698_v31, %v700_v30  ;;  %v702_v34 = vsel %vm701_vm9, %v696_v32, %v698_v31  ;;  %v775_v30 = vsel %vm754_vm10, 1, %v926_v13 }
  0xd3   : > { %v711_v35 = vsel %vm270_vm0, %v703_v33, 0  ;;  %v708_v36 = vsel %vm270_vm0, %v702_v34, 0  ;;  %vm743_vm0 = vmand %vm741_vm13, %vm742_vm14  ;;  %v776_v41 = vperm.slane %v775_v30, 0 }
  0xd4   : > { %720 = vmatpush.bf16.msra.mxu0 %v708_v36  ;;  %733 = vmatpush.bf16.msra.mxu1 %v711_v35  ;;  %v744_v8 = vsel %vm743_vm0, 1, %v926_v13 }
  0xd5   : > { %v745_v17 = vperm.slane %v744_v8, 0  ;;  %v746_v21 = vperm.slane %v744_v8, 1  ;;  %vm778_vm5 = vcmp.eq.s32.totalorder %v776_v41, 1 }
  0xd7   : > { %vm747_vm3 = vcmp.eq.s32.totalorder %v745_v17, 1  ;;  %vm748_vm4 = vcmp.eq.s32.totalorder %v746_v21, 1 }
  0xd8   : > { %884 = vmatmul.msk.bf16.vlgmr.msra.gmra.mxu0 %vm266_vm1, %v883_v37 }
  0xd9   : > { %885 = vmatmul.msk.bf16.vlgmr.msra.gmra.mxu1 %vm266_vm1, %v883_v37  ;;  %vm1065_vm1 = vcmp.eq.s32.totalorder %v401_v9, 1  ;;  %v761_v37 = vperm.slane %v759_v25, 0 }
 0x115   : > { %v286_v42 = vpop.f32.mrf.mxu0  ;;  %v299_v43 = vpop.f32.mrf.mxu1 }
 0x116   : > { %v324_v11 = vadd.f32 %v323_v38, %v286_v42  ;;  %v337_v14 = vadd.f32 %v336_v39, %v299_v43 }
 0x11d   : > { %v288_v44 = vpop.f32.mrf.mxu0  ;;  %v301_v45 = vpop.f32.mrf.mxu1 }
 0x11e   : > { %v777_v45 = vperm.slane %v775_v30, 1 }
 0x120   : > { %vm779_vm6 = vcmp.eq.s32.totalorder %v777_v45, 1 }
 0x125   : > { %v378_v46 = vpop.f32.mrf.mxu0 }
 0x126   : > { %v391_v47 = vpop.f32.mrf.mxu1  ;;  %v395_v18 = vadd.f32 %v378_v46, %v324_v11 }
 0x127   : > { %v396_v23 = vadd.f32 %v391_v47, %v337_v14  ;;  %v771_v47 = vpop.permute.xlu0 %770 }
 0x128   : > { %v405_v31 = vsel %vm1065_vm1, %v395_v18, 0.0 }
 0x129   : > { %v406_v34 = vsel %vm404_vm2, %v396_v23, 0.0 }
 0x12d   : > { %v462_v48 = vpop.f32.mrf.mxu3  ;;  %v380_v49 = vpop.f32.mrf.mxu0 }
 0x12e   : > { %v449_v50 = vpop.f32.mrf.mxu2  ;;  %v393_v51 = vpop.f32.mrf.mxu1 }
 0x135   : > { %v464_v52 = vpop.f32.mrf.mxu3  ;;  %v500_v53 = vpop.f32.mrf.mxu0 }
 0x136   : > { %v451_v54 = vpop.f32.mrf.mxu2  ;;  %v513_v55 = vpop.f32.mrf.mxu1  ;;  %v501_v15 = vadd.f32 %v500_v53, %v449_v50 }
 0x137   : > { %v514_v19 = vadd.f32 %v513_v55, %v462_v48 }
 0x13d   : > { %v502_v57 = vpop.f32.mrf.mxu0 }
 0x13e   : > { %v515_v58 = vpop.f32.mrf.mxu1 }
 0x13f   : > { %v568_v59 = vpop.f32.mrf.mxu3 }
 0x140   : > { %v555_v61 = vpop.f32.mrf.mxu2  ;;  %v573_v26 = vadd.f32 %v568_v59, %v514_v19 }
 0x141   : > { %v572_v24 = vadd.f32 %v555_v61, %v501_v15 }
 0x142   : > { %v575_v38 = vadd.f32 %v573_v26, %v406_v34 }
 0x143   : > { %v574_v35 = vadd.f32 %v572_v24, %v405_v31 }
 0x145   : > { %v616_v63 = vpop.f32.mrf.mxu0 }
 0x146   : > { %v629_v0 = vpop.f32.mrf.mxu1 }
 0x147   : > { %v570_v1 = vpop.f32.mrf.mxu3 }
 0x148   : > { %v557_v3 = vpop.f32.mrf.mxu2 }
 0x14d   : > { %v618_v6 = vpop.f32.mrf.mxu0 }
 0x14e   : > { %v631_v7 = vpop.f32.mrf.mxu1 }
 0x151   : > { %v680_v16 = vpop.f32.mrf.mxu3 }
 0x152   : > { %v667_v20 = vpop.f32.mrf.mxu2  ;;  %v681_v28 = vadd.f32 %v680_v16, %v629_v0 }
 0x153   : > { %v668_v27 = vadd.f32 %v667_v20, %v616_v63 }
 0x155   : > { %v722_v29 = vpop.f32.mrf.mxu0 }
 0x156   : > { %v739_v32 = vadd.f32 %v722_v29, %v668_v27  ;;  %v735_v33 = vpop.f32.mrf.mxu1 }
 0x157   : > { %v740_v36 = vadd.f32 %v735_v33, %v681_v28 }
 0x158   : > { %v749_v39 = vsel %vm747_vm3, %v739_v32, 0.0 }
 0x159   : > { %v751_v42 = vadd.f32 %v749_v39, %v574_v35  ;;  %v750_v43 = vsel %vm748_vm4, %v740_v36, 0.0  ;;  %v682_v44 = vpop.f32.mrf.mxu3 }
 0x15a   : > { %v752_v13 = vadd.f32 %v750_v43, %v575_v38  ;;  %v669_v46 = vpop.f32.mrf.mxu2 }
 0x15b   : > { %v765_v48 = vmul.f32 %v761_v37, %v751_v42 }
 0x15c   : > { %v766_v49 = vmul.f32 %v762_v40, %v752_v13 }
 0x15d   : > { %v773_v50 = vadd.f32 %v771_v47, %v765_v48  ;;  %v724_v51 = vpop.f32.mrf.mxu0 }
 0x15e   : > { %v774_v52 = vadd.f32 %v771_v47, %v766_v49  ;;  %v737_v53 = vpop.f32.mrf.mxu1 }
 0x15f   : > { %v780_v54 = vsel %vm778_vm5, 0.0, %v773_v50 }
 0x160   : > { %v781_v55 = vsel %vm779_vm6, 0.0, %v774_v52  ;;  %782 = vst [vmem:[%s241_s13] sm:$0xff] %v780_v54 }
 0x161   : > { %783 = vst [vmem:[%s241_s13 + $0x8] sm:$0xff] %v781_v55 }
 0x162 PF: > { %s15_s18 = sadd.s32 1, %s916_s18  }
 0x163   : > { %p12_p4 = scmp.ge.s32.totalorder %s15_s18, 4  }
 0x165   :  { %14 = sbr.rel (!%p12_p4) target bundleno = 1 (0x1), region = 81 }

</bundles_post_ra>
